<compile_context>
chip_gen: v7x
topology: tpu7x:2x2x1
jax: 0.10.0
libtpu: 0.0.40
codegen_flags: <defaults>
</compile_context>

<pallas_src>
import jax
import jax.numpy as jnp
import numpy as np
from jax import lax
from jax.experimental import pallas as pl
from jax.experimental.pallas import tpu as pltpu


def _softplus(x):
    # numerically-stable softplus, matches F.softplus semantics
    return jnp.maximum(x, 0.0) + jnp.log1p(jnp.exp(-jnp.abs(x)))


def _round_up(n, m):
    return (n + m - 1) // m * m


def _pick_time_chunk(S, max_chunk=32):
    """Largest divisor of S that is <= max_chunk (S is static under jit)."""
    c = min(S, max_chunk)
    while S % c:
        c -= 1
    return c


def ltc_recurrent_kernel(pre_ref,     # VMEM (T, Bp, Hp)  x @ W_ih + b_ih (precomputed)
                         ratio_ref,   # VMEM (T, 1, Hp)   dt_t / tau      (precomputed)
                         h0_ref,      # VMEM (Bp, Hp)     initial hidden state
                         w_hh_ref,    # VMEM (Hp, Hp)
                         b_hh_ref,    # VMEM (1, Hp)
                         h_seq_ref,   # VMEM (T, Bp, Hp)  per-step hidden states (out)
                         h_last_ref): # VMEM (Bp, Hp)     resident carry / final h (out)
    # Initialize the resident carry from h0 on the first chunk only.
    @pl.when(pl.program_id(0) == 0)
    def _():
        h_last_ref[...] = h0_ref[...]

    w_hh = w_hh_ref[...]
    b_hh = b_hh_ref[...]
    n_steps = pre_ref.shape[0]          # static chunk length

    def step(tt, h):
        pre = (pre_ref[tt]
               + jnp.dot(h, w_hh, preferred_element_type=jnp.float32)
               + b_hh)
        r = ratio_ref[tt]                              # (1, Hp), broadcasts over batch
        # NOTE: r may exceed 1 for large dt (1 - r goes negative); this matches
        # the PyTorch semantics exactly.
        h_new = (1.0 - r) * h + r * jnp.tanh(pre)
        h_seq_ref[tt] = h_new
        return h_new

    h = lax.fori_loop(0, n_steps, step, h_last_ref[...], unroll=True)
    h_last_ref[...] = h


@jax.jit
def ltc_forward(x, time_stamps, params, h0=None):
    """x: (batch, seq_len, input_size); time_stamps: (seq_len,).
    Returns (outputs (batch, seq_len, output_size), h_final (batch, hidden))."""
    B, S, I = x.shape
    H = params["w_hh"].shape[0]
    O = params["w_out"].shape[1]

    x = x.astype(jnp.float32)

    # per-step dt (dt[0] = t[0], dt[t] = t[t] - t[t-1]) -- same as the PyTorch loop
    dt = jnp.concatenate([time_stamps[:1], jnp.diff(time_stamps)]).astype(jnp.float32)

    # ---- hoisted, time-parallel work (plain XLA; sharded across TCs on v7x) ----
    pre_ih = jnp.einsum("bsi,ih->sbh", x, params["w_ih"]) + params["b_ih"]  # (S, B, H)
    tau = _softplus(params["log_tau"]) + 0.001                              # (1, H)
    ratio = (dt[:, None] / tau[0])[:, None, :]                              # (S, 1, H)

    # ---- pad to TPU-friendly shapes: sublanes on batch, lanes on hidden ----
    Bp = _round_up(B, 8)
    Hp = _round_up(H, 128)
    pre_ih_p = jnp.pad(pre_ih, ((0, 0), (0, Bp - B), (0, Hp - H)))
    ratio_p = jnp.pad(ratio, ((0, 0), (0, 0), (0, Hp - H)))
    w_hh_p = jnp.pad(params["w_hh"], ((0, Hp - H), (0, Hp - H)))
    b_hh_p = jnp.pad(params["b_hh"], ((0, 0), (0, Hp - H)))
    if h0 is None:
        h0_p = jnp.zeros((Bp, Hp), jnp.float32)
    else:
        h0_p = jnp.pad(h0.astype(jnp.float32), ((0, Bp - B), (0, Hp - H)))

    # ---- serial recurrence: chunk T timesteps per grid iteration ----
    T = _pick_time_chunk(S)
    grid = (S // T,)

    # TODO(synk): for very large H on v6e/v7x, cast w_hh (and the h matmul
    # operand) to bfloat16 and single-buffer the constant-index weight specs;
    # kept f32 here so the small-shape correctness check is bit-tight.
    h_seq_p, h_last_p = pl.pallas_call(
        ltc_recurrent_kernel,
        grid=grid,
        in_specs=[
            pl.BlockSpec((T, Bp, Hp), lambda c: (c, 0, 0)),   # pre_ih chunk
            pl.BlockSpec((T, 1, Hp), lambda c: (c, 0, 0)),    # ratio chunk
            pl.BlockSpec((Bp, Hp), lambda c: (0, 0)),         # h0
            pl.BlockSpec((Hp, Hp), lambda c: (0, 0)),         # w_hh (resident)
            pl.BlockSpec((1, Hp), lambda c: (0, 0)),          # b_hh (resident)
        ],
        out_specs=[
            pl.BlockSpec((T, Bp, Hp), lambda c: (c, 0, 0)),   # h per step
            pl.BlockSpec((Bp, Hp), lambda c: (0, 0)),         # final h (resident carry)
        ],
        out_shape=(
            jax.ShapeDtypeStruct((S, Bp, Hp), jnp.float32),
            jax.ShapeDtypeStruct((Bp, Hp), jnp.float32),
        ),
        compiler_params=pltpu.CompilerParams(
            dimension_semantics=("arbitrary",)),   # recurrence is inherently serial
    )(pre_ih_p, ratio_p, h0_p, w_hh_p, b_hh_p)

    # ---- deferred output projection: one big lane-dense matmul outside the loop ----
    h_seq = h_seq_p[:, :B, :H]                                         # (S, B, H)
    outputs = jnp.einsum("sbh,ho->bso", h_seq, params["w_out"]) + params["b_out"]
    h_final = h_last_p[:B, :H]
    return outputs, h_final


def init_params(key, input_size, hidden_size, output_size):
    """Deterministic init mimicking nn.Linear (uniform +-1/sqrt(fan_in)).
    Weights stored pre-transposed as (in, out)."""
    k1, k2, k3, k4, k5, k6 = jax.random.split(key, 6)

    def lin(kw, kb, fan_in, fan_out):
        bound = 1.0 / np.sqrt(fan_in)
        w = jax.random.uniform(kw, (fan_in, fan_out), jnp.float32, -bound, bound)
        b = jax.random.uniform(kb, (1, fan_out), jnp.float32, -bound, bound)
        return w, b

    w_ih, b_ih = lin(k1, k2, input_size, hidden_size)
    w_hh, b_hh = lin(k3, k4, hidden_size, hidden_size)
    w_out, b_out = lin(k5, k6, hidden_size, output_size)
    return dict(w_ih=w_ih, b_ih=b_ih, w_hh=w_hh, b_hh=b_hh,
                log_tau=jnp.zeros((1, hidden_size), jnp.float32),
                w_out=w_out, b_out=b_out)


def ltc_reference(x, time_stamps, params, h0):
    """Pure-JAX reference mirroring the PyTorch loop."""
    dt = jnp.concatenate([time_stamps[:1], jnp.diff(time_stamps)])
    tau = _softplus(params["log_tau"]) + 0.001

    def step(h, inp):
        x_t, dt_t = inp
        pre = x_t @ params["w_ih"] + params["b_ih"] + h @ params["w_hh"] + params["b_hh"]
        ratio = dt_t / tau
        h_new = (1.0 - ratio) * h + ratio * jnp.tanh(pre)
        out = h_new @ params["w_out"] + params["b_out"]
        return h_new, out

    h_final, outs = jax.lax.scan(step, h0, (jnp.transpose(x, (1, 0, 2)), dt))
    return jnp.transpose(outs, (1, 0, 2)), h_final


if __name__ == "__main__":
    batch, seq_len = 2, 8
    input_size, hidden_size, output_size = 4, 32, 8

    key = jax.random.PRNGKey(0)
    kx, kt, kp = jax.random.split(key, 3)

    x = jax.random.normal(kx, (batch, seq_len, input_size), jnp.float32)
    # monotonically increasing time stamps
    time_stamps = jnp.cumsum(
        jax.random.uniform(kt, (seq_len,), jnp.float32, 0.05, 0.2))
    params = init_params(kp, input_size, hidden_size, output_size)

    outputs, h_final = ltc_forward(x, time_stamps, params)
    jax.block_until_ready((outputs, h_final))

    # sanity check against pure-JAX reference of the PyTorch semantics
    h0 = jnp.zeros((batch, hidden_size), jnp.float32)
    ref_out, ref_h = ltc_reference(x, time_stamps, params, h0)
    np.testing.assert_allclose(np.asarray(outputs), np.asarray(ref_out),
                               rtol=1e-5, atol=1e-5)
    np.testing.assert_allclose(np.asarray(h_final), np.asarray(ref_h),
                               rtol=1e-5, atol=1e-5)

    print("KERNEL_OK")
</pallas_src>

<mosaic_0001>
module attributes {stable_mosaic.version = 11 : i64} {
  func.func @ltc_recurrent_kernel(%arg0: i32, %arg1: memref<8x8x128xf32, #tpu.memory_space<vmem>>, %arg2: memref<8x1x128xf32, #tpu.memory_space<vmem>>, %arg3: memref<8x128xf32, #tpu.memory_space<vmem>>, %arg4: memref<128x128xf32, #tpu.memory_space<vmem>>, %arg5: memref<1x128xf32, #tpu.memory_space<vmem>>, %arg6: memref<8x8x128xf32, #tpu.memory_space<vmem>>, %arg7: memref<8x128xf32, #tpu.memory_space<vmem>>) attributes {dimension_semantics = [#tpu.dimension_semantics<arbitrary>], iteration_bounds = array<i64: 1>, scalar_prefetch = 0 : i64, scratch_operands = 0 : i64, tpu.core_type = #tpu.core_type<tc>, window_params = [{transform_indices = @transform_0, window_bounds = array<i64: 8, 8, 128>}, {transform_indices = @transform_1, window_bounds = array<i64: 8, 1, 128>}, {pipeline_mode = #tpu.pipeline_mode<synchronous>, transform_indices = @transform_2, window_bounds = array<i64: 8, 128>}, {pipeline_mode = #tpu.pipeline_mode<synchronous>, transform_indices = @transform_3, window_bounds = array<i64: 128, 128>}, {pipeline_mode = #tpu.pipeline_mode<synchronous>, transform_indices = @transform_4, window_bounds = array<i64: 1, 128>}, {transform_indices = @transform_5, window_bounds = array<i64: 8, 8, 128>}, {pipeline_mode = #tpu.pipeline_mode<synchronous>, transform_indices = @transform_6, window_bounds = array<i64: 8, 128>}]} {
    %c0_i32 = arith.constant 0 : i32
    %0 = arith.cmpi eq, %arg0, %c0_i32 : i32
    %1 = arith.extui %0 : i1 to i32
    %c0_i32_0 = arith.constant 0 : i32
    %2 = arith.cmpi ne, %1, %c0_i32_0 : i32
    scf.if %2 {
      %c0_72 = arith.constant 0 : index
      %c0_73 = arith.constant 0 : index
      %183 = vector.load %arg3[%c0_72, %c0_73] : memref<8x128xf32, #tpu.memory_space<vmem>>, vector<8x128xf32>
      %c0_74 = arith.constant 0 : index
      %c0_75 = arith.constant 0 : index
      %184 = vector.load %arg7[%c0_74, %c0_75] : memref<8x128xf32, #tpu.memory_space<vmem>>, vector<8x128xf32>
      tpu.vector_store %arg7[%c0_74, %c0_75], %183 {strides = array<i32>} : memref<8x128xf32, #tpu.memory_space<vmem>>, vector<8x128xf32>,
    } else {
    }
    %c0 = arith.constant 0 : index
    %c0_1 = arith.constant 0 : index
    %3 = vector.load %arg4[%c0, %c0_1] : memref<128x128xf32, #tpu.memory_space<vmem>>, vector<128x128xf32>
    %c0_2 = arith.constant 0 : index
    %c0_3 = arith.constant 0 : index
    %4 = vector.load %arg5[%c0_2, %c0_3] : memref<1x128xf32, #tpu.memory_space<vmem>>, vector<1x128xf32>
    %c0_4 = arith.constant 0 : index
    %c0_5 = arith.constant 0 : index
    %5 = vector.load %arg7[%c0_4, %c0_5] : memref<8x128xf32, #tpu.memory_space<vmem>>, vector<8x128xf32>
    %c0_i32_6 = arith.constant 0 : i32
    %6 = arith.index_cast %c0_i32_6 : i32 to index
    %c0_7 = arith.constant 0 : index
    %c0_8 = arith.constant 0 : index
    %7 = vector.load %arg1[%6, %c0_7, %c0_8] : memref<8x8x128xf32, #tpu.memory_space<vmem>>, vector<1x8x128xf32>
    %8 = vector.shape_cast %7 : vector<1x8x128xf32> to vector<8x128xf32>
    %cst = arith.constant dense<0.000000e+00> : vector<8x128xf32>
    %9 = tpu.matmul %5, %3, %cst {dimension_numbers = #tpu.dot_dimension_numbers<[1], [0], [0], [1], [0, 0, 1, 1], [], []>} : vector<8x128xf32>, vector<128x128xf32>, vector<8x128xf32> -> vector<8x128xf32>
    %10 = arith.addf %8, %9 : vector<8x128xf32>
    %11 = vector.broadcast %4 : vector<1x128xf32> to vector<8x128xf32>
    %12 = arith.addf %10, %11 : vector<8x128xf32>
    %13 = arith.index_cast %c0_i32_6 : i32 to index
    %c0_9 = arith.constant 0 : index
    %c0_10 = arith.constant 0 : index
    %14 = vector.load %arg2[%13, %c0_9, %c0_10] : memref<8x1x128xf32, #tpu.memory_space<vmem>>, vector<1x1x128xf32>
    %15 = vector.shape_cast %14 : vector<1x1x128xf32> to vector<1x128xf32>
    %cst_11 = arith.constant 1.000000e+00 : f32
    %16 = vector.broadcast %cst_11 : f32 to vector<1x128xf32>
    %17 = arith.subf %16, %15 : vector<1x128xf32>
    %18 = vector.broadcast %17 : vector<1x128xf32> to vector<8x128xf32>
    %19 = arith.mulf %18, %5 : vector<8x128xf32>
    %20 = math.tanh %12 : vector<8x128xf32>
    %21 = vector.broadcast %15 : vector<1x128xf32> to vector<8x128xf32>
    %22 = arith.mulf %21, %20 : vector<8x128xf32>
    %23 = arith.addf %19, %22 : vector<8x128xf32>
    %24 = arith.index_cast %c0_i32_6 : i32 to index
    %c0_12 = arith.constant 0 : index
    %c0_13 = arith.constant 0 : index
    %25 = vector.load %arg6[%24, %c0_12, %c0_13] : memref<8x8x128xf32, #tpu.memory_space<vmem>>, vector<1x8x128xf32>
    %26 = vector.shape_cast %25 : vector<1x8x128xf32> to vector<8x128xf32>
    %27 = vector.shape_cast %23 : vector<8x128xf32> to vector<1x8x128xf32>
    tpu.vector_store %arg6[%24, %c0_12, %c0_13], %27 {strides = array<i32>} : memref<8x8x128xf32, #tpu.memory_space<vmem>>, vector<1x8x128xf32>,
    %c1_i32 = arith.constant 1 : i32
    %28 = arith.index_cast %c1_i32 : i32 to index
    %c0_14 = arith.constant 0 : index
    %c0_15 = arith.constant 0 : index
    %29 = vector.load %arg1[%28, %c0_14, %c0_15] : memref<8x8x128xf32, #tpu.memory_space<vmem>>, vector<1x8x128xf32>
    %30 = vector.shape_cast %29 : vector<1x8x128xf32> to vector<8x128xf32>
    %cst_16 = arith.constant dense<0.000000e+00> : vector<8x128xf32>
    %31 = tpu.matmul %23, %3, %cst_16 {dimension_numbers = #tpu.dot_dimension_numbers<[1], [0], [0], [1], [0, 0, 1, 1], [], []>} : vector<8x128xf32>, vector<128x128xf32>, vector<8x128xf32> -> vector<8x128xf32>
    %32 = arith.addf %30, %31 : vector<8x128xf32>
    %33 = vector.broadcast %4 : vector<1x128xf32> to vector<8x128xf32>
    %34 = arith.addf %32, %33 : vector<8x128xf32>
    %35 = arith.index_cast %c1_i32 : i32 to index
    %c0_17 = arith.constant 0 : index
    %c0_18 = arith.constant 0 : index
    %36 = vector.load %arg2[%35, %c0_17, %c0_18] : memref<8x1x128xf32, #tpu.memory_space<vmem>>, vector<1x1x128xf32>
    %37 = vector.shape_cast %36 : vector<1x1x128xf32> to vector<1x128xf32>
    %cst_19 = arith.constant 1.000000e+00 : f32
    %38 = vector.broadcast %cst_19 : f32 to vector<1x128xf32>
    %39 = arith.subf %38, %37 : vector<1x128xf32>
    %40 = vector.broadcast %39 : vector<1x128xf32> to vector<8x128xf32>
    %41 = arith.mulf %40, %23 : vector<8x128xf32>
    %42 = math.tanh %34 : vector<8x128xf32>
    %43 = vector.broadcast %37 : vector<1x128xf32> to vector<8x128xf32>
    %44 = arith.mulf %43, %42 : vector<8x128xf32>
    %45 = arith.addf %41, %44 : vector<8x128xf32>
    %46 = arith.index_cast %c1_i32 : i32 to index
    %c0_20 = arith.constant 0 : index
    %c0_21 = arith.constant 0 : index
    %47 = vector.load %arg6[%46, %c0_20, %c0_21] : memref<8x8x128xf32, #tpu.memory_space<vmem>>, vector<1x8x128xf32>
    %48 = vector.shape_cast %47 : vector<1x8x128xf32> to vector<8x128xf32>
    %49 = vector.shape_cast %45 : vector<8x128xf32> to vector<1x8x128xf32>
    tpu.vector_store %arg6[%46, %c0_20, %c0_21], %49 {strides = array<i32>} : memref<8x8x128xf32, #tpu.memory_space<vmem>>, vector<1x8x128xf32>,
    %c2_i32 = arith.constant 2 : i32
    %50 = arith.index_cast %c2_i32 : i32 to index
    %c0_22 = arith.constant 0 : index
    %c0_23 = arith.constant 0 : index
    %51 = vector.load %arg1[%50, %c0_22, %c0_23] : memref<8x8x128xf32, #tpu.memory_space<vmem>>, vector<1x8x128xf32>
    %52 = vector.shape_cast %51 : vector<1x8x128xf32> to vector<8x128xf32>
    %cst_24 = arith.constant dense<0.000000e+00> : vector<8x128xf32>
    %53 = tpu.matmul %45, %3, %cst_24 {dimension_numbers = #tpu.dot_dimension_numbers<[1], [0], [0], [1], [0, 0, 1, 1], [], []>} : vector<8x128xf32>, vector<128x128xf32>, vector<8x128xf32> -> vector<8x128xf32>
    %54 = arith.addf %52, %53 : vector<8x128xf32>
    %55 = vector.broadcast %4 : vector<1x128xf32> to vector<8x128xf32>
    %56 = arith.addf %54, %55 : vector<8x128xf32>
    %57 = arith.index_cast %c2_i32 : i32 to index
    %c0_25 = arith.constant 0 : index
    %c0_26 = arith.constant 0 : index
    %58 = vector.load %arg2[%57, %c0_25, %c0_26] : memref<8x1x128xf32, #tpu.memory_space<vmem>>, vector<1x1x128xf32>
    %59 = vector.shape_cast %58 : vector<1x1x128xf32> to vector<1x128xf32>
    %cst_27 = arith.constant 1.000000e+00 : f32
    %60 = vector.broadcast %cst_27 : f32 to vector<1x128xf32>
    %61 = arith.subf %60, %59 : vector<1x128xf32>
    %62 = vector.broadcast %61 : vector<1x128xf32> to vector<8x128xf32>
    %63 = arith.mulf %62, %45 : vector<8x128xf32>
    %64 = math.tanh %56 : vector<8x128xf32>
    %65 = vector.broadcast %59 : vector<1x128xf32> to vector<8x128xf32>
    %66 = arith.mulf %65, %64 : vector<8x128xf32>
    %67 = arith.addf %63, %66 : vector<8x128xf32>
    %68 = arith.index_cast %c2_i32 : i32 to index
    %c0_28 = arith.constant 0 : index
    %c0_29 = arith.constant 0 : index
    %69 = vector.load %arg6[%68, %c0_28, %c0_29] : memref<8x8x128xf32, #tpu.memory_space<vmem>>, vector<1x8x128xf32>
    %70 = vector.shape_cast %69 : vector<1x8x128xf32> to vector<8x128xf32>
    %71 = vector.shape_cast %67 : vector<8x128xf32> to vector<1x8x128xf32>
    tpu.vector_store %arg6[%68, %c0_28, %c0_29], %71 {strides = array<i32>} : memref<8x8x128xf32, #tpu.memory_space<vmem>>, vector<1x8x128xf32>,
    %c3_i32 = arith.constant 3 : i32
    %72 = arith.index_cast %c3_i32 : i32 to index
    %c0_30 = arith.constant 0 : index
    %c0_31 = arith.constant 0 : index
    %73 = vector.load %arg1[%72, %c0_30, %c0_31] : memref<8x8x128xf32, #tpu.memory_space<vmem>>, vector<1x8x128xf32>
    %74 = vector.shape_cast %73 : vector<1x8x128xf32> to vector<8x128xf32>
    %cst_32 = arith.constant dense<0.000000e+00> : vector<8x128xf32>
    %75 = tpu.matmul %67, %3, %cst_32 {dimension_numbers = #tpu.dot_dimension_numbers<[1], [0], [0], [1], [0, 0, 1, 1], [], []>} : vector<8x128xf32>, vector<128x128xf32>, vector<8x128xf32> -> vector<8x128xf32>
    %76 = arith.addf %74, %75 : vector<8x128xf32>
    %77 = vector.broadcast %4 : vector<1x128xf32> to vector<8x128xf32>
    %78 = arith.addf %76, %77 : vector<8x128xf32>
    %79 = arith.index_cast %c3_i32 : i32 to index
    %c0_33 = arith.constant 0 : index
    %c0_34 = arith.constant 0 : index
    %80 = vector.load %arg2[%79, %c0_33, %c0_34] : memref<8x1x128xf32, #tpu.memory_space<vmem>>, vector<1x1x128xf32>
    %81 = vector.shape_cast %80 : vector<1x1x128xf32> to vector<1x128xf32>
    %cst_35 = arith.constant 1.000000e+00 : f32
    %82 = vector.broadcast %cst_35 : f32 to vector<1x128xf32>
    %83 = arith.subf %82, %81 : vector<1x128xf32>
    %84 = vector.broadcast %83 : vector<1x128xf32> to vector<8x128xf32>
    %85 = arith.mulf %84, %67 : vector<8x128xf32>
    %86 = math.tanh %78 : vector<8x128xf32>
    %87 = vector.broadcast %81 : vector<1x128xf32> to vector<8x128xf32>
    %88 = arith.mulf %87, %86 : vector<8x128xf32>
    %89 = arith.addf %85, %88 : vector<8x128xf32>
    %90 = arith.index_cast %c3_i32 : i32 to index
    %c0_36 = arith.constant 0 : index
    %c0_37 = arith.constant 0 : index
    %91 = vector.load %arg6[%90, %c0_36, %c0_37] : memref<8x8x128xf32, #tpu.memory_space<vmem>>, vector<1x8x128xf32>
    %92 = vector.shape_cast %91 : vector<1x8x128xf32> to vector<8x128xf32>
    %93 = vector.shape_cast %89 : vector<8x128xf32> to vector<1x8x128xf32>
    tpu.vector_store %arg6[%90, %c0_36, %c0_37], %93 {strides = array<i32>} : memref<8x8x128xf32, #tpu.memory_space<vmem>>, vector<1x8x128xf32>,
    %c4_i32 = arith.constant 4 : i32
    %94 = arith.index_cast %c4_i32 : i32 to index
    %c0_38 = arith.constant 0 : index
    %c0_39 = arith.constant 0 : index
    %95 = vector.load %arg1[%94, %c0_38, %c0_39] : memref<8x8x128xf32, #tpu.memory_space<vmem>>, vector<1x8x128xf32>
    %96 = vector.shape_cast %95 : vector<1x8x128xf32> to vector<8x128xf32>
    %cst_40 = arith.constant dense<0.000000e+00> : vector<8x128xf32>
    %97 = tpu.matmul %89, %3, %cst_40 {dimension_numbers = #tpu.dot_dimension_numbers<[1], [0], [0], [1], [0, 0, 1, 1], [], []>} : vector<8x128xf32>, vector<128x128xf32>, vector<8x128xf32> -> vector<8x128xf32>
    %98 = arith.addf %96, %97 : vector<8x128xf32>
    %99 = vector.broadcast %4 : vector<1x128xf32> to vector<8x128xf32>
    %100 = arith.addf %98, %99 : vector<8x128xf32>
    %101 = arith.index_cast %c4_i32 : i32 to index
    %c0_41 = arith.constant 0 : index
    %c0_42 = arith.constant 0 : index
    %102 = vector.load %arg2[%101, %c0_41, %c0_42] : memref<8x1x128xf32, #tpu.memory_space<vmem>>, vector<1x1x128xf32>
    %103 = vector.shape_cast %102 : vector<1x1x128xf32> to vector<1x128xf32>
    %cst_43 = arith.constant 1.000000e+00 : f32
    %104 = vector.broadcast %cst_43 : f32 to vector<1x128xf32>
    %105 = arith.subf %104, %103 : vector<1x128xf32>
    %106 = vector.broadcast %105 : vector<1x128xf32> to vector<8x128xf32>
    %107 = arith.mulf %106, %89 : vector<8x128xf32>
    %108 = math.tanh %100 : vector<8x128xf32>
    %109 = vector.broadcast %103 : vector<1x128xf32> to vector<8x128xf32>
    %110 = arith.mulf %109, %108 : vector<8x128xf32>
    %111 = arith.addf %107, %110 : vector<8x128xf32>
    %112 = arith.index_cast %c4_i32 : i32 to index
    %c0_44 = arith.constant 0 : index
    %c0_45 = arith.constant 0 : index
    %113 = vector.load %arg6[%112, %c0_44, %c0_45] : memref<8x8x128xf32, #tpu.memory_space<vmem>>, vector<1x8x128xf32>
    %114 = vector.shape_cast %113 : vector<1x8x128xf32> to vector<8x128xf32>
    %115 = vector.shape_cast %111 : vector<8x128xf32> to vector<1x8x128xf32>
    tpu.vector_store %arg6[%112, %c0_44, %c0_45], %115 {strides = array<i32>} : memref<8x8x128xf32, #tpu.memory_space<vmem>>, vector<1x8x128xf32>,
    %c5_i32 = arith.constant 5 : i32
    %116 = arith.index_cast %c5_i32 : i32 to index
    %c0_46 = arith.constant 0 : index
    %c0_47 = arith.constant 0 : index
    %117 = vector.load %arg1[%116, %c0_46, %c0_47] : memref<8x8x128xf32, #tpu.memory_space<vmem>>, vector<1x8x128xf32>
    %118 = vector.shape_cast %117 : vector<1x8x128xf32> to vector<8x128xf32>
    %cst_48 = arith.constant dense<0.000000e+00> : vector<8x128xf32>
    %119 = tpu.matmul %111, %3, %cst_48 {dimension_numbers = #tpu.dot_dimension_numbers<[1], [0], [0], [1], [0, 0, 1, 1], [], []>} : vector<8x128xf32>, vector<128x128xf32>, vector<8x128xf32> -> vector<8x128xf32>
    %120 = arith.addf %118, %119 : vector<8x128xf32>
    %121 = vector.broadcast %4 : vector<1x128xf32> to vector<8x128xf32>
    %122 = arith.addf %120, %121 : vector<8x128xf32>
    %123 = arith.index_cast %c5_i32 : i32 to index
    %c0_49 = arith.constant 0 : index
    %c0_50 = arith.constant 0 : index
    %124 = vector.load %arg2[%123, %c0_49, %c0_50] : memref<8x1x128xf32, #tpu.memory_space<vmem>>, vector<1x1x128xf32>
    %125 = vector.shape_cast %124 : vector<1x1x128xf32> to vector<1x128xf32>
    %cst_51 = arith.constant 1.000000e+00 : f32
    %126 = vector.broadcast %cst_51 : f32 to vector<1x128xf32>
    %127 = arith.subf %126, %125 : vector<1x128xf32>
    %128 = vector.broadcast %127 : vector<1x128xf32> to vector<8x128xf32>
    %129 = arith.mulf %128, %111 : vector<8x128xf32>
    %130 = math.tanh %122 : vector<8x128xf32>
    %131 = vector.broadcast %125 : vector<1x128xf32> to vector<8x128xf32>
    %132 = arith.mulf %131, %130 : vector<8x128xf32>
    %133 = arith.addf %129, %132 : vector<8x128xf32>
    %134 = arith.index_cast %c5_i32 : i32 to index
    %c0_52 = arith.constant 0 : index
    %c0_53 = arith.constant 0 : index
    %135 = vector.load %arg6[%134, %c0_52, %c0_53] : memref<8x8x128xf32, #tpu.memory_space<vmem>>, vector<1x8x128xf32>
    %136 = vector.shape_cast %135 : vector<1x8x128xf32> to vector<8x128xf32>
    %137 = vector.shape_cast %133 : vector<8x128xf32> to vector<1x8x128xf32>
    tpu.vector_store %arg6[%134, %c0_52, %c0_53], %137 {strides = array<i32>} : memref<8x8x128xf32, #tpu.memory_space<vmem>>, vector<1x8x128xf32>,
    %c6_i32 = arith.constant 6 : i32
    %138 = arith.index_cast %c6_i32 : i32 to index
    %c0_54 = arith.constant 0 : index
    %c0_55 = arith.constant 0 : index
    %139 = vector.load %arg1[%138, %c0_54, %c0_55] : memref<8x8x128xf32, #tpu.memory_space<vmem>>, vector<1x8x128xf32>
    %140 = vector.shape_cast %139 : vector<1x8x128xf32> to vector<8x128xf32>
    %cst_56 = arith.constant dense<0.000000e+00> : vector<8x128xf32>
    %141 = tpu.matmul %133, %3, %cst_56 {dimension_numbers = #tpu.dot_dimension_numbers<[1], [0], [0], [1], [0, 0, 1, 1], [], []>} : vector<8x128xf32>, vector<128x128xf32>, vector<8x128xf32> -> vector<8x128xf32>
    %142 = arith.addf %140, %141 : vector<8x128xf32>
    %143 = vector.broadcast %4 : vector<1x128xf32> to vector<8x128xf32>
    %144 = arith.addf %142, %143 : vector<8x128xf32>
    %145 = arith.index_cast %c6_i32 : i32 to index
    %c0_57 = arith.constant 0 : index
    %c0_58 = arith.constant 0 : index
    %146 = vector.load %arg2[%145, %c0_57, %c0_58] : memref<8x1x128xf32, #tpu.memory_space<vmem>>, vector<1x1x128xf32>
    %147 = vector.shape_cast %146 : vector<1x1x128xf32> to vector<1x128xf32>
    %cst_59 = arith.constant 1.000000e+00 : f32
    %148 = vector.broadcast %cst_59 : f32 to vector<1x128xf32>
    %149 = arith.subf %148, %147 : vector<1x128xf32>
    %150 = vector.broadcast %149 : vector<1x128xf32> to vector<8x128xf32>
    %151 = arith.mulf %150, %133 : vector<8x128xf32>
    %152 = math.tanh %144 : vector<8x128xf32>
    %153 = vector.broadcast %147 : vector<1x128xf32> to vector<8x128xf32>
    %154 = arith.mulf %153, %152 : vector<8x128xf32>
    %155 = arith.addf %151, %154 : vector<8x128xf32>
    %156 = arith.index_cast %c6_i32 : i32 to index
    %c0_60 = arith.constant 0 : index
    %c0_61 = arith.constant 0 : index
    %157 = vector.load %arg6[%156, %c0_60, %c0_61] : memref<8x8x128xf32, #tpu.memory_space<vmem>>, vector<1x8x128xf32>
    %158 = vector.shape_cast %157 : vector<1x8x128xf32> to vector<8x128xf32>
    %159 = vector.shape_cast %155 : vector<8x128xf32> to vector<1x8x128xf32>
    tpu.vector_store %arg6[%156, %c0_60, %c0_61], %159 {strides = array<i32>} : memref<8x8x128xf32, #tpu.memory_space<vmem>>, vector<1x8x128xf32>,
    %c7_i32 = arith.constant 7 : i32
    %160 = arith.index_cast %c7_i32 : i32 to index
    %c0_62 = arith.constant 0 : index
    %c0_63 = arith.constant 0 : index
    %161 = vector.load %arg1[%160, %c0_62, %c0_63] : memref<8x8x128xf32, #tpu.memory_space<vmem>>, vector<1x8x128xf32>
    %162 = vector.shape_cast %161 : vector<1x8x128xf32> to vector<8x128xf32>
    %cst_64 = arith.constant dense<0.000000e+00> : vector<8x128xf32>
    %163 = tpu.matmul %155, %3, %cst_64 {dimension_numbers = #tpu.dot_dimension_numbers<[1], [0], [0], [1], [0, 0, 1, 1], [], []>} : vector<8x128xf32>, vector<128x128xf32>, vector<8x128xf32> -> vector<8x128xf32>
    %164 = arith.addf %162, %163 : vector<8x128xf32>
    %165 = vector.broadcast %4 : vector<1x128xf32> to vector<8x128xf32>
    %166 = arith.addf %164, %165 : vector<8x128xf32>
    %167 = arith.index_cast %c7_i32 : i32 to index
    %c0_65 = arith.constant 0 : index
    %c0_66 = arith.constant 0 : index
    %168 = vector.load %arg2[%167, %c0_65, %c0_66] : memref<8x1x128xf32, #tpu.memory_space<vmem>>, vector<1x1x128xf32>
    %169 = vector.shape_cast %168 : vector<1x1x128xf32> to vector<1x128xf32>
    %cst_67 = arith.constant 1.000000e+00 : f32
    %170 = vector.broadcast %cst_67 : f32 to vector<1x128xf32>
    %171 = arith.subf %170, %169 : vector<1x128xf32>
    %172 = vector.broadcast %171 : vector<1x128xf32> to vector<8x128xf32>
    %173 = arith.mulf %172, %155 : vector<8x128xf32>
    %174 = math.tanh %166 : vector<8x128xf32>
    %175 = vector.broadcast %169 : vector<1x128xf32> to vector<8x128xf32>
    %176 = arith.mulf %175, %174 : vector<8x128xf32>
    %177 = arith.addf %173, %176 : vector<8x128xf32>
    %178 = arith.index_cast %c7_i32 : i32 to index
    %c0_68 = arith.constant 0 : index
    %c0_69 = arith.constant 0 : index
    %179 = vector.load %arg6[%178, %c0_68, %c0_69] : memref<8x8x128xf32, #tpu.memory_space<vmem>>, vector<1x8x128xf32>
    %180 = vector.shape_cast %179 : vector<1x8x128xf32> to vector<8x128xf32>
    %181 = vector.shape_cast %177 : vector<8x128xf32> to vector<1x8x128xf32>
    tpu.vector_store %arg6[%178, %c0_68, %c0_69], %181 {strides = array<i32>} : memref<8x8x128xf32, #tpu.memory_space<vmem>>, vector<1x8x128xf32>,
    %c8_i32 = arith.constant 8 : i32
    %c0_70 = arith.constant 0 : index
    %c0_71 = arith.constant 0 : index
    %182 = vector.load %arg7[%c0_70, %c0_71] : memref<8x128xf32, #tpu.memory_space<vmem>>, vector<8x128xf32>
    tpu.vector_store %arg7[%c0_70, %c0_71], %177 {strides = array<i32>} : memref<8x128xf32, #tpu.memory_space<vmem>>, vector<8x128xf32>,
    return
  }
  func.func @transform_0(%arg0: i32) -> (i32, i32, i32) {
    %c0_i32 = arith.constant 0 : i32
    %c0_i32_0 = arith.constant 0 : i32
    %c0_i32_1 = arith.constant 0 : i32
    return %arg0, %c0_i32, %c0_i32_0 : i32, i32, i32
  }
  func.func @transform_1(%arg0: i32) -> (i32, i32, i32) {
    %c0_i32 = arith.constant 0 : i32
    %c0_i32_0 = arith.constant 0 : i32
    %c0_i32_1 = arith.constant 0 : i32
    return %arg0, %c0_i32, %c0_i32_0 : i32, i32, i32
  }
  func.func @transform_2(%arg0: i32) -> (i32, i32) {
    %c0_i32 = arith.constant 0 : i32
    %c0_i32_0 = arith.constant 0 : i32
    %c0_i32_1 = arith.constant 0 : i32
    return %c0_i32, %c0_i32_0 : i32, i32
  }
  func.func @transform_3(%arg0: i32) -> (i32, i32) {
    %c0_i32 = arith.constant 0 : i32
    %c0_i32_0 = arith.constant 0 : i32
    %c0_i32_1 = arith.constant 0 : i32
    return %c0_i32, %c0_i32_0 : i32, i32
  }
  func.func @transform_4(%arg0: i32) -> (i32, i32) {
    %c0_i32 = arith.constant 0 : i32
    %c0_i32_0 = arith.constant 0 : i32
    %c0_i32_1 = arith.constant 0 : i32
    return %c0_i32, %c0_i32_0 : i32, i32
  }
  func.func @transform_5(%arg0: i32) -> (i32, i32, i32) {
    %c0_i32 = arith.constant 0 : i32
    %c0_i32_0 = arith.constant 0 : i32
    %c0_i32_1 = arith.constant 0 : i32
    return %arg0, %c0_i32, %c0_i32_0 : i32, i32, i32
  }
  func.func @transform_6(%arg0: i32) -> (i32, i32) {
    %c0_i32 = arith.constant 0 : i32
    %c0_i32_0 = arith.constant 0 : i32
    %c0_i32_1 = arith.constant 0 : i32
    return %c0_i32, %c0_i32_0 : i32, i32
  }
}

</mosaic_0001>

<bundles_post_ra>
// kernel: ltc_forward.1
= control target key start
LH: loop header
LB: loop body
LE: loop exit
PB: predicated region body
PF: predicated region fallthrough
CT: control target
= control target key end

     0   :  { %v1467_v0 = vmov 0.0|0.0   ;;  %vm1468_vm0 = vmmov 0   ;;  %v1469_v4 = vmov 0.0   ;;  %v128_v27 = vlaneseq  ;;  %s1822_s3 = inlined_call_operand.vmem [shape: f32[128,128], index: 3, kind: input, shape index: {}]   ;;  %s1823_s2 = inlined_call_operand.vmem [shape: f32[8,128], index: 2, kind: input, shape index: {}]   ;;  %s1824_s0 = inlined_call_operand.vmem [shape: f32[8,8,128], index: 0, kind: input, shape index: {}]   ;;  %s1825_s4 = inlined_call_operand.vmem [shape: f32[1,128], index: 4, kind: input, shape index: {}]   ;;  %s1826_s1 = inlined_call_operand.vmem [shape: f32[8,1,128], index: 1, kind: input, shape index: {}]   ;;  %s1827_s5 = inlined_call_operand.vmem [shape: f32[8,8,128], index: 5, kind: output, shape index: {0}]   ;;  %s1828_s6 = inlined_call_operand.vmem [shape: f32[8,128], index: 6, kind: output, shape index: {1}]  }
   0x1   :  { %1256 = vmatprep.subr.bf16.mxu0 %v1467_v0  ;;  %v28_v1 = vld [vmem:[%s1822_s3] sm:$0xff]  ;;  %v29_v2 = vld [vmem:[%s1822_s3 + $0x8] sm:$0xff]  ;;  %v30_v3 = vld [vmem:[%s1822_s3 + $0x10] sm:$0xff]  ;;  %1008 = vmatprep.mubr.msk.f32.mxu0 %vm1468_vm0, %v1469_v4 }
   0x2   :  { %v1517_v5 = vpack.c.bf16 %v29_v2, %v28_v1  ;;  %v31_v6 = vld [vmem:[%s1822_s3 + $0x18] sm:$0xff]  ;;  %1280 = vmatprep.subr.bf16.mxu1 %v1467_v0  ;;  %1043 = vmatprep.mubr.msk.f32.mxu1 %vm1468_vm0, %v1469_v4  ;;  %v32_v8 = vld [vmem:[%s1822_s3 + $0x20] sm:$0xff]  ;;  %v33_v9 = vld [vmem:[%s1822_s3 + $0x28] sm:$0xff]  ;;  %v129_v33 = vshrl.u32 %v128_v27, 7 }
   0x3   :  { %v1526_v7 = vpack.c.bf16 %v31_v6, %v30_v3  ;;  %v1538_v10 = vpack.c.bf16 %v33_v9, %v32_v8  ;;  %v34_v11 = vld [vmem:[%s1822_s3 + $0x30] sm:$0xff]  ;;  %v35_v12 = vld [vmem:[%s1822_s3 + $0x38] sm:$0xff]  ;;  %v36_v14 = vld [vmem:[%s1822_s3 + $0x40] sm:$0xff] }
   0x4   :  { %1258 = vmatpush3.bf16.msra.mxu0 %v1517_v5  ;;  %1282 = vmatpush3.bf16.msra.mxu1 %v1517_v5  ;;  %v1550_v13 = vpack.c.bf16 %v35_v12, %v34_v11  ;;  %v37_v15 = vld [vmem:[%s1822_s3 + $0x48] sm:$0xff]  ;;  %v38_v17 = vld [vmem:[%s1822_s3 + $0x50] sm:$0xff]  ;;  %v39_v18 = vld [vmem:[%s1822_s3 + $0x58] sm:$0xff]  ;;  %v1640_v37 = vsub.s32 0, %v129_v33 }
   0x5   :  { %1259 = vmatprep.subr.bf16.mxu0 %v1467_v0  ;;  %1283 = vmatprep.subr.bf16.mxu1 %v1467_v0  ;;  %v1562_v16 = vpack.c.bf16 %v37_v15, %v36_v14  ;;  %v1574_v19 = vpack.c.bf16 %v39_v18, %v38_v17  ;;  %v40_v20 = vld [vmem:[%s1822_s3 + $0x60] sm:$0xff]  ;;  %v41_v21 = vld [vmem:[%s1822_s3 + $0x68] sm:$0xff]  ;;  %v42_v23 = vld [vmem:[%s1822_s3 + $0x70] sm:$0xff] }
   0x6   :  { %v1586_v22 = vpack.c.bf16 %v41_v21, %v40_v20  ;;  %v43_v24 = vld [vmem:[%s1822_s3 + $0x78] sm:$0xff]  ;;  %v26_v26 = vld [vmem:[%s1823_s2] sm:$0xff]  ;;  %v819_v44 = vld [vmem:[%s1824_s0 + $0x8] sm:$0xff] }
   0x7   :  { %v1598_v25 = vpack.c.bf16 %v43_v24, %v42_v23  ;;  %v46_v28 = vld [vmem:[%s1824_s0] sm:$0xff]  ;;  %v822_v57 = vld [vmem:[%s1824_s0 + $0x10] sm:$0xff]  ;;  %v825_v11 = vld [vmem:[%s1824_s0 + $0x18] sm:$0xff] }
   0x8   :  { %1261 = vmatpush3.bf16.msra.mxu0 %v1526_v7  ;;  %1285 = vmatpush3.bf16.msra.mxu1 %v1526_v7  ;;  %v1634_v29 = vld [vmem:[%s1825_s4] ss:$0 sm:$0xff]  ;;  %v820_v49 = vld [vmem:[%s1826_s1 + $0x1] sm:$0x1]  ;;  %v823_v62 = vld [vmem:[%s1826_s1 + $0x2] sm:$0x1] }
   0x9   :  { %1262 = vmatprep.subr.bf16.mxu0 %v1467_v0  ;;  %1286 = vmatprep.subr.bf16.mxu1 %v1467_v0  ;;  %v125_v34 = vld [vmem:[%s1826_s1] sm:$0x1]  ;;  %v220_v50 = vsub.f32 1.0, %v820_v49  ;;  %v233_v52 = vrot.slane %v820_v49, %v1640_v37  ;;  %v315_v63 = vsub.f32 1.0, %v823_v62  ;;  %v328_v2 = vrot.slane %v823_v62, %v1640_v37  ;;  %v826_v18 = vld [vmem:[%s1826_s1 + $0x3] sm:$0x1] }
   0xa   :  { %v126_v36 = vsub.f32 1.0, %v125_v34  ;;  %v139_v39 = vrot.slane %v125_v34, %v1640_v37  ;;  %v410_v20 = vsub.f32 1.0, %v826_v18  ;;  %v423_v23 = vrot.slane %v826_v18, %v1640_v37 }
   0xb   :  { %v225_v51 = vrot.slane %v220_v50, %v1640_v37  ;;  %v320_v1 = vrot.slane %v315_v63, %v1640_v37 }
   0xc   :  { %1264 = vmatpush3.bf16.msra.mxu0 %v1538_v10  ;;  %1288 = vmatpush3.bf16.msra.mxu1 %v1538_v10  ;;  %v131_v38 = vrot.slane %v126_v36, %v1640_v37  ;;  %v415_v21 = vrot.slane %v410_v20, %v1640_v37 }
   0xd   :  { %1265 = vmatprep.subr.bf16.mxu0 %v1467_v0  ;;  %1289 = vmatprep.subr.bf16.mxu1 %v1467_v0 }
   0xe   :  { %v133_v40 = vmul.f32 %v131_v38, %v26_v26 }
  0x10   :  { %1267 = vmatpush3.bf16.msra.mxu0 %v1550_v13  ;;  %1291 = vmatpush3.bf16.msra.mxu1 %v1550_v13 }
  0x11   :  { %1268 = vmatprep.subr.bf16.mxu0 %v1467_v0  ;;  %1292 = vmatprep.subr.bf16.mxu1 %v1467_v0 }
  0x14   :  { %1270 = vmatpush3.bf16.msra.mxu0 %v1562_v16  ;;  %1294 = vmatpush3.bf16.msra.mxu1 %v1562_v16 }
  0x15   :  { %1271 = vmatprep.subr.bf16.mxu0 %v1467_v0  ;;  %1295 = vmatprep.subr.bf16.mxu1 %v1467_v0 }
  0x18   :  { %1273 = vmatpush3.bf16.msra.mxu0 %v1574_v19  ;;  %1297 = vmatpush3.bf16.msra.mxu1 %v1574_v19 }
  0x19   :  { %1274 = vmatprep.subr.bf16.mxu0 %v1467_v0  ;;  %1298 = vmatprep.subr.bf16.mxu1 %v1467_v0 }
  0x1c   :  { %1276 = vmatpush3.bf16.msra.mxu0 %v1586_v22  ;;  %1300 = vmatpush3.bf16.msra.mxu1 %v1586_v22 }
  0x1d   :  { %1277 = vmatprep.subr.bf16.mxu0 %v1467_v0  ;;  %1301 = vmatprep.subr.bf16.mxu1 %v1467_v0 }
  0x20   :  { %1279 = vmatpush3.bf16.msra.mxu0 %v1598_v25  ;;  %1303 = vmatpush3.bf16.msra.mxu1 %v1598_v25 }
  0x21   :  { %1304 = vmatprep.subr.bf16.mxu0 %v1467_v0  ;;  %1328 = vmatprep.subr.bf16.mxu1 %v1467_v0 }
  0x23   :  { %1009 = vmatmul.mubr.f32.vlgmr.msra.gmra.mrb[0].mxu0 %v26_v26 }
  0x24   :  { %1306 = vmatpush3.bf16.msra.mxu0 %v1517_v5  ;;  %1078 = vmatprep.mubr.msk.f32.mxu0 %vm1468_vm0, %v1469_v4 }
  0x25   :  { %1307 = vmatprep.subr.bf16.mxu0 %v1467_v0 }
  0x28   :  { %1309 = vmatpush3.bf16.msra.mxu0 %v1526_v7 }
  0x29   :  { %1310 = vmatprep.subr.bf16.mxu0 %v1467_v0 }
  0x2c   :  { %1312 = vmatpush3.bf16.msra.mxu0 %v1538_v10 }
  0x2d   :  { %1313 = vmatprep.subr.bf16.mxu0 %v1467_v0 }
  0x30   :  { %1315 = vmatpush3.bf16.msra.mxu0 %v1550_v13 }
  0x31   :  { %1316 = vmatprep.subr.bf16.mxu0 %v1467_v0 }
  0x34   :  { %1318 = vmatpush3.bf16.msra.mxu0 %v1562_v16 }
  0x35   :  { %1319 = vmatprep.subr.bf16.mxu0 %v1467_v0 }
  0x38   :  { %1321 = vmatpush3.bf16.msra.mxu0 %v1574_v19 }
  0x39   :  { %1322 = vmatprep.subr.bf16.mxu0 %v1467_v0 }
  0x3c   :  { %1324 = vmatpush3.bf16.msra.mxu0 %v1586_v22 }
  0x3d   :  { %1325 = vmatprep.subr.bf16.mxu0 %v1467_v0 }
  0x40   :  { %1327 = vmatpush3.bf16.msra.mxu0 %v1598_v25 }
  0x41   :  { %1352 = vmatprep.subr.bf16.mxu0 %v1467_v0 }
  0xf6   :  { %v113_v30 = vpop.f32.mrb[0].mxu0 }
  0xf7   :  { %v117_v31 = vadd.f32 %v113_v30, %v46_v28  ;;  %v1010_v32 = vpop.f32.mrb[1].mxu0  ;;  %v828_v30 = vld [vmem:[%s1824_s0 + $0x20] sm:$0xff] }
  0xf9   :  { %v124_v35 = vadd.f32 %v1634_v29, %v117_v31 }
  0xfb   :  { %1451 = vtanh.f32 %v124_v35  ;;  %v829_v35 = vld [vmem:[%s1826_s1 + $0x4] sm:$0x1] }
  0xfc   :  { %v505_v36 = vsub.f32 1.0, %v829_v35 }
  0xfe   :  { %v510_v38 = vrot.slane %v505_v36, %v1640_v37 }
 0x105   :  { %v1452_v41 = vpop.eup %1451 }
 0x106   :  { %v141_v42 = vmul.f32 %v1452_v41, %v139_v39  ;;  %v518_v39 = vrot.slane %v829_v35, %v1640_v37 }
 0x108   :  { %v142_v43 = vadd.f32 %v141_v42, %v133_v40 }
 0x10a   :  { %143 = vst [vmem:[%s1827_s5] sm:$0xff] %v142_v43  ;;  %1044 = vmatmul.mubr.f32.vlgmr.msra.gmra.mrb[0].mxu1 %v142_v43  ;;  %v227_v54 = vmul.f32 %v225_v51, %v142_v43 }
 0x10b   :  { %1330 = vmatpush3.bf16.msra.mxu1 %v1517_v5  ;;  %1113 = vmatprep.mubr.msk.f32.mxu1 %vm1468_vm0, %v1469_v4 }
 0x10c   :  { %1331 = vmatprep.subr.bf16.mxu1 %v1467_v0 }
 0x10f   :  { %1333 = vmatpush3.bf16.msra.mxu1 %v1526_v7 }
 0x110   :  { %1334 = vmatprep.subr.bf16.mxu1 %v1467_v0 }
 0x113   :  { %1336 = vmatpush3.bf16.msra.mxu1 %v1538_v10 }
 0x114   :  { %1337 = vmatprep.subr.bf16.mxu1 %v1467_v0 }
 0x117   :  { %1339 = vmatpush3.bf16.msra.mxu1 %v1550_v13 }
 0x118   :  { %1340 = vmatprep.subr.bf16.mxu1 %v1467_v0 }
 0x11b   :  { %1342 = vmatpush3.bf16.msra.mxu1 %v1562_v16 }
 0x11c   :  { %1343 = vmatprep.subr.bf16.mxu1 %v1467_v0 }
 0x11f   :  { %1345 = vmatpush3.bf16.msra.mxu1 %v1574_v19 }
 0x120   :  { %1346 = vmatprep.subr.bf16.mxu1 %v1467_v0 }
 0x123   :  { %1348 = vmatpush3.bf16.msra.mxu1 %v1586_v22 }
 0x124   :  { %1349 = vmatprep.subr.bf16.mxu1 %v1467_v0 }
 0x127   :  { %1351 = vmatpush3.bf16.msra.mxu1 %v1598_v25 }
 0x128   :  { %1376 = vmatprep.subr.bf16.mxu1 %v1467_v0 }
 0x1dd   :  { %v212_v45 = vpop.f32.mrb[0].mxu1 }
 0x1de   :  { %v216_v46 = vadd.f32 %v819_v44, %v212_v45  ;;  %v1045_v47 = vpop.f32.mrb[1].mxu1 }
 0x1df   :  { %v834_v47 = vld [vmem:[%s1824_s0 + $0x30] sm:$0xff] }
 0x1e0   :  { %v217_v48 = vadd.f32 %v1634_v29, %v216_v46 }
 0x1e2   :  { %1453 = vtanh.f32 %v217_v48 }
 0x1ec   :  { %v1454_v53 = vpop.eup %1453 }
 0x1ed   :  { %v235_v55 = vmul.f32 %v1454_v53, %v233_v52  ;;  %v835_v52 = vld [vmem:[%s1826_s1 + $0x6] sm:$0x1] }
 0x1ee   :  { %v695_v53 = vsub.f32 1.0, %v835_v52 }
 0x1ef   :  { %v236_v56 = vadd.f32 %v235_v55, %v227_v54  ;;  %v708_v55 = vrot.slane %v835_v52, %v1640_v37 }
 0x1f0   :  { %v700_v54 = vrot.slane %v695_v53, %v1640_v37 }
 0x1f1   :  { %821 = vst [vmem:[%s1827_s5 + $0x8] sm:$0xff] %v236_v56  ;;  %1079 = vmatmul.mubr.f32.vlgmr.msra.gmra.mrb[2].mxu0 %v236_v56  ;;  %v322_v6 = vmul.f32 %v320_v1, %v236_v56 }
 0x1f2   :  { %1354 = vmatpush3.bf16.msra.mxu0 %v1517_v5  ;;  %1148 = vmatprep.mubr.msk.f32.mxu0 %vm1468_vm0, %v1469_v4 }
 0x1f3   :  { %1355 = vmatprep.subr.bf16.mxu0 %v1467_v0 }
 0x1f6   :  { %1357 = vmatpush3.bf16.msra.mxu0 %v1526_v7 }
 0x1f7   :  { %1358 = vmatprep.subr.bf16.mxu0 %v1467_v0 }
 0x1fa   :  { %1360 = vmatpush3.bf16.msra.mxu0 %v1538_v10 }
 0x1fb   :  { %1361 = vmatprep.subr.bf16.mxu0 %v1467_v0 }
 0x1fe   :  { %1363 = vmatpush3.bf16.msra.mxu0 %v1550_v13 }
 0x1ff   :  { %1364 = vmatprep.subr.bf16.mxu0 %v1467_v0 }
 0x202   :  { %1366 = vmatpush3.bf16.msra.mxu0 %v1562_v16 }
 0x203   :  { %1367 = vmatprep.subr.bf16.mxu0 %v1467_v0 }
 0x206   :  { %1369 = vmatpush3.bf16.msra.mxu0 %v1574_v19 }
 0x207   :  { %1370 = vmatprep.subr.bf16.mxu0 %v1467_v0 }
 0x20a   :  { %1372 = vmatpush3.bf16.msra.mxu0 %v1586_v22 }
 0x20b   :  { %1373 = vmatprep.subr.bf16.mxu0 %v1467_v0 }
 0x20e   :  { %1375 = vmatpush3.bf16.msra.mxu0 %v1598_v25 }
 0x20f   :  { %1400 = vmatprep.subr.bf16.mxu0 %v1467_v0 }
 0x2c4   :  { %v307_v58 = vpop.f32.mrb[2].mxu0 }
 0x2c5   :  { %v311_v59 = vadd.f32 %v822_v57, %v307_v58  ;;  %v1080_v60 = vpop.f32.mrb[3].mxu0 }
 0x2c6   :  { %v837_v60 = vld [vmem:[%s1824_s0 + $0x38] sm:$0xff] }
 0x2c7   :  { %v312_v61 = vadd.f32 %v1634_v29, %v311_v59 }
 0x2c9   :  { %1455 = vtanh.f32 %v312_v61 }
 0x2d3   :  { %v1456_v3 = vpop.eup %1455 }
 0x2d4   :  { %v330_v8 = vmul.f32 %v1456_v3, %v328_v2  ;;  %v838_v2 = vld [vmem:[%s1826_s1 + $0x7] sm:$0x1] }
 0x2d5   :  { %v790_v3 = vsub.f32 1.0, %v838_v2 }
 0x2d6   :  { %v331_v9 = vadd.f32 %v330_v8, %v322_v6  ;;  %v803_v8 = vrot.slane %v838_v2, %v1640_v37 }
 0x2d7   :  { %v795_v6 = vrot.slane %v790_v3, %v1640_v37 }
 0x2d8   :  { %824 = vst [vmem:[%s1827_s5 + $0x10] sm:$0xff] %v331_v9  ;;  %1114 = vmatmul.mubr.f32.vlgmr.msra.gmra.mrb[2].mxu1 %v331_v9  ;;  %v417_v26 = vmul.f32 %v415_v21, %v331_v9 }
 0x2d9   :  { %1378 = vmatpush3.bf16.msra.mxu1 %v1517_v5  ;;  %1183 = vmatprep.mubr.msk.f32.mxu1 %vm1468_vm0, %v1469_v4 }
 0x2da   :  { %1379 = vmatprep.subr.bf16.mxu1 %v1467_v0 }
 0x2dd   :  { %1381 = vmatpush3.bf16.msra.mxu1 %v1526_v7 }
 0x2de   :  { %1382 = vmatprep.subr.bf16.mxu1 %v1467_v0 }
 0x2e1   :  { %1384 = vmatpush3.bf16.msra.mxu1 %v1538_v10 }
 0x2e2   :  { %1385 = vmatprep.subr.bf16.mxu1 %v1467_v0 }
 0x2e5   :  { %1387 = vmatpush3.bf16.msra.mxu1 %v1550_v13 }
 0x2e6   :  { %1388 = vmatprep.subr.bf16.mxu1 %v1467_v0 }
 0x2e9   :  { %1390 = vmatpush3.bf16.msra.mxu1 %v1562_v16 }
 0x2ea   :  { %1391 = vmatprep.subr.bf16.mxu1 %v1467_v0 }
 0x2ed   :  { %1393 = vmatpush3.bf16.msra.mxu1 %v1574_v19 }
 0x2ee   :  { %1394 = vmatprep.subr.bf16.mxu1 %v1467_v0 }
 0x2f1   :  { %1396 = vmatpush3.bf16.msra.mxu1 %v1586_v22 }
 0x2f2   :  { %1397 = vmatprep.subr.bf16.mxu1 %v1467_v0 }
 0x2f5   :  { %1399 = vmatpush3.bf16.msra.mxu1 %v1598_v25 }
 0x2f6   :  { %1424 = vmatprep.subr.bf16.mxu1 %v1467_v0 }
 0x3ab   :  { %v402_v12 = vpop.f32.mrb[2].mxu1 }
 0x3ac   :  { %v406_v14 = vadd.f32 %v825_v11, %v402_v12  ;;  %v1115_v15 = vpop.f32.mrb[3].mxu1 }
 0x3ae   :  { %v407_v17 = vadd.f32 %v1634_v29, %v406_v14 }
 0x3b0   :  { %1457 = vtanh.f32 %v407_v17 }
 0x3ba   :  { %v1458_v24 = vpop.eup %1457 }
 0x3bb   :  { %v425_v27 = vmul.f32 %v1458_v24, %v423_v23 }
 0x3bd   :  { %v426_v28 = vadd.f32 %v425_v27, %v417_v26 }
 0x3bf   :  { %827 = vst [vmem:[%s1827_s5 + $0x18] sm:$0xff] %v426_v28  ;;  %1149 = vmatmul.mubr.f32.vlgmr.msra.gmra.mrb[4].mxu0 %v426_v28  ;;  %v512_v41 = vmul.f32 %v510_v38, %v426_v28 }
 0x3c0   :  { %1402 = vmatpush3.bf16.msra.mxu0 %v1517_v5  ;;  %1218 = vmatprep.mubr.msk.f32.mxu0 %vm1468_vm0, %v1469_v4 }
 0x3c1   :  { %1403 = vmatprep.subr.bf16.mxu0 %v1467_v0 }
 0x3c4   :  { %1405 = vmatpush3.bf16.msra.mxu0 %v1526_v7 }
 0x3c5   :  { %1406 = vmatprep.subr.bf16.mxu0 %v1467_v0 }
 0x3c8   :  { %1408 = vmatpush3.bf16.msra.mxu0 %v1538_v10 }
 0x3c9   :  { %1409 = vmatprep.subr.bf16.mxu0 %v1467_v0 }
 0x3cc   :  { %1411 = vmatpush3.bf16.msra.mxu0 %v1550_v13 }
 0x3cd   :  { %1412 = vmatprep.subr.bf16.mxu0 %v1467_v0 }
 0x3d0   :  { %1414 = vmatpush3.bf16.msra.mxu0 %v1562_v16 }
 0x3d1   :  { %1415 = vmatprep.subr.bf16.mxu0 %v1467_v0 }
 0x3d4   :  { %1417 = vmatpush3.bf16.msra.mxu0 %v1574_v19 }
 0x3d5   :  { %1418 = vmatprep.subr.bf16.mxu0 %v1467_v0 }
 0x3d8   :  { %1420 = vmatpush3.bf16.msra.mxu0 %v1586_v22 }
 0x3d9   :  { %1421 = vmatprep.subr.bf16.mxu0 %v1467_v0 }
 0x3dc   :  { %1423 = vmatpush3.bf16.msra.mxu0 %v1598_v25 }
 0x492   :  { %v497_v31 = vpop.f32.mrb[4].mxu0 }
 0x493   :  { %v501_v32 = vadd.f32 %v828_v30, %v497_v31  ;;  %v1150_v33 = vpop.f32.mrb[5].mxu0 }
 0x495   :  { %v502_v34 = vadd.f32 %v1634_v29, %v501_v32 }
 0x497   :  { %1459 = vtanh.f32 %v502_v34 }
 0x4a1   :  { %v1460_v40 = vpop.eup %1459 }
 0x4a2   :  { %v520_v42 = vmul.f32 %v1460_v40, %v518_v39 }
 0x4a4   :  { %v521_v43 = vadd.f32 %v520_v42, %v512_v41 }
 0x4a6   :  { %830 = vst [vmem:[%s1827_s5 + $0x20] sm:$0xff] %v521_v43  ;;  %1184 = vmatmul.mubr.f32.vlgmr.msra.gmra.mrb[4].mxu1 %v521_v43 }
 0x4a7   :  { %1426 = vmatpush3.bf16.msra.mxu1 %v1517_v5  ;;  %1253 = vmatprep.mubr.msk.f32.mxu1 %vm1468_vm0, %v1469_v4  ;;  %v831_v4 = vld [vmem:[%s1824_s0 + $0x28] sm:$0xff] }
 0x4a8   :  { %1427 = vmatprep.subr.bf16.mxu1 %v1467_v0 }
 0x4ab   :  { %1429 = vmatpush3.bf16.msra.mxu1 %v1526_v7 }
 0x4ac   :  { %1430 = vmatprep.subr.bf16.mxu1 %v1467_v0 }
 0x4af   :  { %1432 = vmatpush3.bf16.msra.mxu1 %v1538_v10 }
 0x4b0   :  { %1433 = vmatprep.subr.bf16.mxu1 %v1467_v0 }
 0x4b3   :  { %1435 = vmatpush3.bf16.msra.mxu1 %v1550_v13 }
 0x4b4   :  { %1436 = vmatprep.subr.bf16.mxu1 %v1467_v0 }
 0x4b7   :  { %1438 = vmatpush3.bf16.msra.mxu1 %v1562_v16  ;;  %v832_v16 = vld [vmem:[%s1826_s1 + $0x5] sm:$0x1] }
 0x4b8   :  { %1439 = vmatprep.subr.bf16.mxu1 %v1467_v0 }
 0x4bb   :  { %1441 = vmatpush3.bf16.msra.mxu1 %v1574_v19  ;;  %v600_v19 = vsub.f32 1.0, %v832_v16 }
 0x4bc   :  { %1442 = vmatprep.subr.bf16.mxu1 %v1467_v0 }
 0x4bf   :  { %1444 = vmatpush3.bf16.msra.mxu1 %v1586_v22  ;;  %v605_v22 = vrot.slane %v600_v19, %v1640_v37 }
 0x4c0   :  { %1445 = vmatprep.subr.bf16.mxu1 %v1467_v0  ;;  %v613_v0 = vrot.slane %v832_v16, %v1640_v37 }
 0x4c1   :  { %v607_v44 = vmul.f32 %v605_v22, %v521_v43 }
 0x4c3   :  { %1447 = vmatpush3.bf16.msra.mxu1 %v1598_v25 }
 0x579   :  { %v592_v5 = vpop.f32.mrb[4].mxu1 }
 0x57a   :  { %v596_v7 = vadd.f32 %v831_v4, %v592_v5  ;;  %v1185_v10 = vpop.f32.mrb[5].mxu1 }
 0x57c   :  { %v597_v13 = vadd.f32 %v1634_v29, %v596_v7 }
 0x57e   :  { %1461 = vtanh.f32 %v597_v13 }
 0x588   :  { %v1462_v25 = vpop.eup %1461 }
 0x589   :  { %v615_v45 = vmul.f32 %v1462_v25, %v613_v0 }
 0x58b   :  { %v616_v46 = vadd.f32 %v615_v45, %v607_v44 }
 0x58d   :  { %833 = vst [vmem:[%s1827_s5 + $0x28] sm:$0xff] %v616_v46  ;;  %1219 = vmatmul.mubr.f32.vlgmr.msra.gmra.mrb[6].mxu0 %v616_v46  ;;  %v702_v57 = vmul.f32 %v700_v54, %v616_v46 }
 0x660   :  { %v687_v48 = vpop.f32.mrb[6].mxu0 }
 0x661   :  { %v691_v49 = vadd.f32 %v834_v47, %v687_v48  ;;  %v1220_v50 = vpop.f32.mrb[7].mxu0 }
 0x663   :  { %v692_v51 = vadd.f32 %v1634_v29, %v691_v49 }
 0x665   :  { %1463 = vtanh.f32 %v692_v51 }
 0x66f   :  { %v1464_v56 = vpop.eup %1463 }
 0x670   :  { %v710_v58 = vmul.f32 %v1464_v56, %v708_v55 }
 0x672   :  { %v711_v59 = vadd.f32 %v710_v58, %v702_v57 }
 0x674   :  { %836 = vst [vmem:[%s1827_s5 + $0x30] sm:$0xff] %v711_v59  ;;  %1254 = vmatmul.mubr.f32.vlgmr.msra.gmra.mrb[6].mxu1 %v711_v59  ;;  %v797_v11 = vmul.f32 %v795_v6, %v711_v59 }
 0x747   :  { %v782_v61 = vpop.f32.mrb[6].mxu1 }
 0x748   :  { %v786_v62 = vadd.f32 %v837_v60, %v782_v61  ;;  %v1255_v63 = vpop.f32.mrb[7].mxu1 }
 0x74a   :  { %v787_v1 = vadd.f32 %v1634_v29, %v786_v62 }
 0x74c   :  { %1465 = vtanh.f32 %v787_v1 }
 0x756   :  { %v1466_v9 = vpop.eup %1465 }
 0x757   :  { %v805_v12 = vmul.f32 %v1466_v9, %v803_v8 }
 0x759   :  { %v806_v14 = vadd.f32 %v805_v12, %v797_v11 }
 0x75b   :  { %839 = vst [vmem:[%s1827_s5 + $0x38] sm:$0xff] %v806_v14  ;;  %809 = vst [vmem:[%s1828_s6] sm:$0xff] %v806_v14 }

</bundles_post_ra>
